<compile_context>
chip_gen: v6e
topology: v6e:2x2x1
jax: 0.10.0
libtpu: 0.0.40
codegen_flags: <defaults>
</compile_context>

<pallas_src>
import math

import jax
import jax.numpy as jnp
from jax.experimental import pallas as pl
from jax.experimental.pallas import tpu as pltpu

_MAX_TILE = 2048        # rows per grid step for large batches
_SINGLE_STEP_MAX = 256  # below this, one full-array block (lowest latency)


def _mlp_kernel(x_ref, w1_ref, b1_ref, w2_ref, b2_ref, w3_ref, b3_ref, o_ref):
    # fc1 + ReLU  (f32 accumulation on the MXU)
    h1 = jnp.dot(x_ref[...], w1_ref[...], preferred_element_type=jnp.float32)
    h1 = jnp.maximum(h1 + b1_ref[...], 0.0)
    # fc2 + ReLU
    h2 = jnp.dot(h1, w2_ref[...], preferred_element_type=jnp.float32)
    h2 = jnp.maximum(h2 + b2_ref[...], 0.0)
    # output_layer + Sigmoid (real out_dim lanes only -> narrow, dense HBM writeback)
    logits = jnp.dot(h2, w3_ref[...], preferred_element_type=jnp.float32)
    o_ref[...] = jax.nn.sigmoid(logits + b3_ref[...]).astype(o_ref.dtype)


def _round_up(n, m):
    return ((n + m - 1) // m) * m


def _batch_tiling(B):
    """Return (rows_per_step, num_steps) with no padding of x.

    Small batches: one full-array block (legal for any row count).
    Large batches: 16-row-aligned tile (bf16-safe sublane multiple), cdiv
    grid, even step count so v7x's two TensorCores split the work evenly.
    """
    if B <= _SINGLE_STEP_MAX:
        return B, 1
    steps = max(2, pl.cdiv(B, _MAX_TILE))
    steps += steps % 2
    tile = _round_up(pl.cdiv(B, steps), 16)
    return tile, pl.cdiv(B, tile)


def power_system_nn_forward(x, params):
    """Fused PowerSystemNN forward: sigmoid(relu(relu(x@w1+b1)@w2+b2)@w3+b3).

    x: [B, input_dim], float32 (bf16 also accepted if supplied by the caller;
       weights stay float32 and accumulation is float32).
    params: w1 [in,64], b1 [1,64], w2 [64,32], b2 [1,32],
            w3 [32,out], b3 [1,out].
    """
    B, input_dim = x.shape
    h1 = params["w1"].shape[1]
    h2 = params["w2"].shape[1]
    out_dim = params["w3"].shape[1]

    tile, steps = _batch_tiling(B)

    full = lambda shape: pl.BlockSpec(shape, lambda i: (0, 0))

    return pl.pallas_call(
        _mlp_kernel,
        out_shape=jax.ShapeDtypeStruct((B, out_dim), x.dtype),
        grid_spec=pltpu.PrefetchScalarGridSpec(
            num_scalar_prefetch=0,
            grid=(steps,),
            in_specs=[
                pl.BlockSpec((tile, input_dim), lambda i: (i, 0)),  # x
                full((input_dim, h1)),   # w1 (full-array block, VMEM-resident)
                full((1, h1)),           # b1
                full((h1, h2)),          # w2
                full((1, h2)),           # b2
                full((h2, out_dim)),     # w3
                full((1, out_dim)),      # b3
            ],
            out_specs=pl.BlockSpec((tile, out_dim), lambda i: (i, 0)),
        ),
        compiler_params=pltpu.CompilerParams(
            dimension_semantics=("parallel",),
        ),
    )(x, params["w1"], params["b1"], params["w2"], params["b2"],
      params["w3"], params["b3"])


def init_params(key, input_dim, output_dim):
    """Deterministic init mimicking PyTorch nn.Linear default U(-1/sqrt(fan_in), +)."""
    hidden1, hidden2 = 64, 32
    dims = [(input_dim, hidden1), (hidden1, hidden2), (hidden2, output_dim)]
    params = {}
    for idx, (fan_in, fan_out) in enumerate(dims, start=1):
        key, kw, kb = jax.random.split(key, 3)
        bound = 1.0 / math.sqrt(fan_in)
        params[f"w{idx}"] = jax.random.uniform(
            kw, (fan_in, fan_out), jnp.float32, -bound, bound)
        params[f"b{idx}"] = jax.random.uniform(
            kb, (1, fan_out), jnp.float32, -bound, bound)
    return params


def reference_forward(x, params):
    h = jnp.maximum(x @ params["w1"] + params["b1"], 0.0)
    h = jnp.maximum(h @ params["w2"] + params["b2"], 0.0)
    return jax.nn.sigmoid(h @ params["w3"] + params["b3"])


if __name__ == "__main__":
    key = jax.random.PRNGKey(0)
    k_params, k_x = jax.random.split(key)

    batch, input_dim, output_dim = 16, 16, 4
    params = init_params(k_params, input_dim, output_dim)
    x = jax.random.normal(k_x, (batch, input_dim), jnp.float32)

    out = jax.block_until_ready(power_system_nn_forward(x, params))
    ref = reference_forward(x, params)
    assert out.shape == (batch, output_dim)
    assert jnp.allclose(out, ref, atol=1e-5, rtol=1e-5)

    # non-multiple-of-8 batch: single full-array block, no padding
    x2 = jax.random.normal(k_x, (37, input_dim), jnp.float32)
    out2 = jax.block_until_ready(power_system_nn_forward(x2, params))
    assert out2.shape == (37, output_dim)
    assert jnp.allclose(out2, reference_forward(x2, params), atol=1e-5, rtol=1e-5)

    # larger batch: multi-step cdiv grid with a ragged last block, no padding
    x3 = jax.random.normal(k_x, (600, input_dim), jnp.float32)
    out3 = jax.block_until_ready(power_system_nn_forward(x3, params))
    assert out3.shape == (600, output_dim)
    assert jnp.allclose(out3, reference_forward(x3, params), atol=1e-5, rtol=1e-5)

    print("KERNEL_OK")
</pallas_src>

<mosaic_0001>
module attributes {stable_mosaic.version = 11 : i64} {
  func.func @_mlp_kernel(%arg0: i32, %arg1: memref<16x16xf32, #tpu.memory_space<vmem>>, %arg2: memref<16x64xf32, #tpu.memory_space<vmem>>, %arg3: memref<1x64xf32, #tpu.memory_space<vmem>>, %arg4: memref<64x32xf32, #tpu.memory_space<vmem>>, %arg5: memref<1x32xf32, #tpu.memory_space<vmem>>, %arg6: memref<32x4xf32, #tpu.memory_space<vmem>>, %arg7: memref<1x4xf32, #tpu.memory_space<vmem>>, %arg8: memref<16x4xf32, #tpu.memory_space<vmem>>) attributes {dimension_semantics = [#tpu.dimension_semantics<parallel>], iteration_bounds = array<i64: 1>, scalar_prefetch = 0 : i64, scratch_operands = 0 : i64, tpu.core_type = #tpu.core_type<tc>, window_params = [{transform_indices = @transform_0, window_bounds = array<i64: 16, 16>}, {pipeline_mode = #tpu.pipeline_mode<synchronous>, transform_indices = @transform_1, window_bounds = array<i64: 16, 64>}, {pipeline_mode = #tpu.pipeline_mode<synchronous>, transform_indices = @transform_2, window_bounds = array<i64: 1, 64>}, {pipeline_mode = #tpu.pipeline_mode<synchronous>, transform_indices = @transform_3, window_bounds = array<i64: 64, 32>}, {pipeline_mode = #tpu.pipeline_mode<synchronous>, transform_indices = @transform_4, window_bounds = array<i64: 1, 32>}, {pipeline_mode = #tpu.pipeline_mode<synchronous>, transform_indices = @transform_5, window_bounds = array<i64: 32, 4>}, {pipeline_mode = #tpu.pipeline_mode<synchronous>, transform_indices = @transform_6, window_bounds = array<i64: 1, 4>}, {transform_indices = @transform_7, window_bounds = array<i64: 16, 4>}]} {
    %c0 = arith.constant 0 : index
    %c0_0 = arith.constant 0 : index
    %0 = vector.load %arg1[%c0, %c0_0] : memref<16x16xf32, #tpu.memory_space<vmem>>, vector<16x16xf32>
    %c0_1 = arith.constant 0 : index
    %c0_2 = arith.constant 0 : index
    %1 = vector.load %arg2[%c0_1, %c0_2] : memref<16x64xf32, #tpu.memory_space<vmem>>, vector<16x64xf32>
    %cst = arith.constant dense<0.000000e+00> : vector<16x64xf32>
    %2 = tpu.matmul %0, %1, %cst {dimension_numbers = #tpu.dot_dimension_numbers<[1], [0], [0], [1], [0, 0, 1, 1], [], []>} : vector<16x16xf32>, vector<16x64xf32>, vector<16x64xf32> -> vector<16x64xf32>
    %c0_3 = arith.constant 0 : index
    %c0_4 = arith.constant 0 : index
    %3 = vector.load %arg3[%c0_3, %c0_4] : memref<1x64xf32, #tpu.memory_space<vmem>>, vector<1x64xf32>
    %4 = vector.broadcast %3 : vector<1x64xf32> to vector<16x64xf32>
    %5 = arith.addf %2, %4 : vector<16x64xf32>
    %cst_5 = arith.constant 0.000000e+00 : f32
    %6 = vector.broadcast %cst_5 : f32 to vector<16x64xf32>
    %7 = arith.maximumf %5, %6 : vector<16x64xf32>
    %c0_6 = arith.constant 0 : index
    %c0_7 = arith.constant 0 : index
    %8 = vector.load %arg4[%c0_6, %c0_7] : memref<64x32xf32, #tpu.memory_space<vmem>>, vector<64x32xf32>
    %cst_8 = arith.constant dense<0.000000e+00> : vector<16x32xf32>
    %9 = tpu.matmul %7, %8, %cst_8 {dimension_numbers = #tpu.dot_dimension_numbers<[1], [0], [0], [1], [0, 0, 1, 1], [], []>} : vector<16x64xf32>, vector<64x32xf32>, vector<16x32xf32> -> vector<16x32xf32>
    %c0_9 = arith.constant 0 : index
    %c0_10 = arith.constant 0 : index
    %10 = vector.load %arg5[%c0_9, %c0_10] : memref<1x32xf32, #tpu.memory_space<vmem>>, vector<1x32xf32>
    %11 = vector.broadcast %10 : vector<1x32xf32> to vector<16x32xf32>
    %12 = arith.addf %9, %11 : vector<16x32xf32>
    %cst_11 = arith.constant 0.000000e+00 : f32
    %13 = vector.broadcast %cst_11 : f32 to vector<16x32xf32>
    %14 = arith.maximumf %12, %13 : vector<16x32xf32>
    %c0_12 = arith.constant 0 : index
    %c0_13 = arith.constant 0 : index
    %15 = vector.load %arg6[%c0_12, %c0_13] : memref<32x4xf32, #tpu.memory_space<vmem>>, vector<32x4xf32>
    %cst_14 = arith.constant dense<0.000000e+00> : vector<16x4xf32>
    %16 = tpu.matmul %14, %15, %cst_14 {dimension_numbers = #tpu.dot_dimension_numbers<[1], [0], [0], [1], [0, 0, 1, 1], [], []>} : vector<16x32xf32>, vector<32x4xf32>, vector<16x4xf32> -> vector<16x4xf32>
    %c0_15 = arith.constant 0 : index
    %c0_16 = arith.constant 0 : index
    %17 = vector.load %arg7[%c0_15, %c0_16] : memref<1x4xf32, #tpu.memory_space<vmem>>, vector<1x4xf32>
    %18 = vector.broadcast %17 : vector<1x4xf32> to vector<16x4xf32>
    %19 = arith.addf %16, %18 : vector<16x4xf32>
    %20 = arith.negf %19 : vector<16x4xf32>
    %21 = math.exp %20 : vector<16x4xf32>
    %cst_17 = arith.constant 1.000000e+00 : f32
    %22 = vector.broadcast %cst_17 : f32 to vector<16x4xf32>
    %23 = arith.addf %22, %21 : vector<16x4xf32>
    %24 = arith.divf %22, %23 : vector<16x4xf32>
    %c0_18 = arith.constant 0 : index
    %c0_19 = arith.constant 0 : index
    %25 = vector.load %arg8[%c0_18, %c0_19] : memref<16x4xf32, #tpu.memory_space<vmem>>, vector<16x4xf32>
    tpu.vector_store %arg8[%c0_18, %c0_19], %24 {strides = array<i32>} : memref<16x4xf32, #tpu.memory_space<vmem>>, vector<16x4xf32>,
    return
  }
  func.func @transform_0(%arg0: i32) -> (i32, i32) {
    %c0_i32 = arith.constant 0 : i32
    %c0_i32_0 = arith.constant 0 : i32
    return %arg0, %c0_i32 : i32, i32
  }
  func.func @transform_1(%arg0: i32) -> (i32, i32) {
    %c0_i32 = arith.constant 0 : i32
    %c0_i32_0 = arith.constant 0 : i32
    %c0_i32_1 = arith.constant 0 : i32
    return %c0_i32, %c0_i32_0 : i32, i32
  }
  func.func @transform_2(%arg0: i32) -> (i32, i32) {
    %c0_i32 = arith.constant 0 : i32
    %c0_i32_0 = arith.constant 0 : i32
    %c0_i32_1 = arith.constant 0 : i32
    return %c0_i32, %c0_i32_0 : i32, i32
  }
  func.func @transform_3(%arg0: i32) -> (i32, i32) {
    %c0_i32 = arith.constant 0 : i32
    %c0_i32_0 = arith.constant 0 : i32
    %c0_i32_1 = arith.constant 0 : i32
    return %c0_i32, %c0_i32_0 : i32, i32
  }
  func.func @transform_4(%arg0: i32) -> (i32, i32) {
    %c0_i32 = arith.constant 0 : i32
    %c0_i32_0 = arith.constant 0 : i32
    %c0_i32_1 = arith.constant 0 : i32
    return %c0_i32, %c0_i32_0 : i32, i32
  }
  func.func @transform_5(%arg0: i32) -> (i32, i32) {
    %c0_i32 = arith.constant 0 : i32
    %c0_i32_0 = arith.constant 0 : i32
    %c0_i32_1 = arith.constant 0 : i32
    return %c0_i32, %c0_i32_0 : i32, i32
  }
  func.func @transform_6(%arg0: i32) -> (i32, i32) {
    %c0_i32 = arith.constant 0 : i32
    %c0_i32_0 = arith.constant 0 : i32
    %c0_i32_1 = arith.constant 0 : i32
    return %c0_i32, %c0_i32_0 : i32, i32
  }
  func.func @transform_7(%arg0: i32) -> (i32, i32) {
    %c0_i32 = arith.constant 0 : i32
    %c0_i32_0 = arith.constant 0 : i32
    return %arg0, %c0_i32 : i32, i32
  }
}

</mosaic_0001>

<bundles_post_ra>
// kernel: tpu_custom_call.1
= control target key start
LH: loop header
LB: loop body
LE: loop exit
PB: predicated region body
PF: predicated region fallthrough
CT: control target
= control target key end

     0   :  { %vm37_vm0 = vcmask 130048   ;;  %vm136_vm1 = vcmask 523264   ;;  %vm231_vm2 = vcmask 261120   ;;  %vm325_vm3 = vcmask 31744   ;;  %s513_s1 = inlined_call_operand.vmem [shape: f32[16,64], index: 1, kind: input, shape index: {}]   ;;  %s514_s0 = inlined_call_operand.vmem [shape: f32[16,16], index: 0, kind: input, shape index: {}]   ;;  %s515_s3 = inlined_call_operand.vmem [shape: f32[64,32], index: 3, kind: input, shape index: {}]   ;;  %s516_s2 = inlined_call_operand.vmem [shape: f32[1,64], index: 2, kind: input, shape index: {}]   ;;  %s517_s5 = inlined_call_operand.vmem [shape: f32[32,4], index: 5, kind: input, shape index: {}]   ;;  %s518_s4 = inlined_call_operand.vmem [shape: f32[1,32], index: 4, kind: input, shape index: {}]   ;;  %s519_s6 = inlined_call_operand.vmem [shape: f32[1,4], index: 6, kind: input, shape index: {}]   ;;  %s520_s7 = inlined_call_operand.vmem [shape: f32[16,4], index: 7, kind: output, shape index: {}]  }
   0x1   :  { %v29_v0 = vld [vmem:[%s513_s1 + $0x8] sm:$0xff]  ;;  %v28_v1 = vld [vmem:[%s513_s1] sm:$0xff]  ;;  %v128_v3 = vld [vmem:[%s515_s3 + $0x38] sm:$0xff] }
   0x2   :  { %v26_v2 = vld [vmem:[%s514_s0] sm:$0xff]  ;;  %363 = vmatprep.subr.mxu0 %v29_v0  ;;  %v127_v4 = vld [vmem:[%s515_s3 + $0x30] sm:$0xff]  ;;  %v27_v5 = vld [vmem:[%s514_s0 + $0x8] sm:$0xff]  ;;  %370 = vmatprep.subr.mxu1 %v128_v3 }
   0x3   :  { %367 = vmatprep.mubr.msk.f32.mxu0 %vm37_vm0, %v26_v2  ;;  %364 = vmatpush3.msra.mxu0 %v29_v0  ;;  %v126_v6 = vld [vmem:[%s515_s3 + $0x28] sm:$0xff]  ;;  %v125_v7 = vld [vmem:[%s515_s3 + $0x20] sm:$0xff]  ;;  %v124_v8 = vld [vmem:[%s515_s3 + $0x18] sm:$0xff] }
   0x4   :  { %365 = vmatprep.subr.mxu0 %v28_v1  ;;  %371 = vmatpush3.msra.mxu1 %v128_v3  ;;  %v123_v9 = vld [vmem:[%s515_s3 + $0x10] sm:$0xff]  ;;  %v122_v10 = vld [vmem:[%s515_s3 + $0x8] sm:$0xff]  ;;  %v121_v11 = vld [vmem:[%s515_s3] sm:$0xff] }
   0x5   :  { %366 = vmatpush3.msra.mxu0 %v28_v1  ;;  %372 = vmatprep.subr.mxu1 %v127_v4  ;;  %v332_v12 = vld [vmem:[%s516_s2] ss:$0 sm:$0xff]  ;;  %v223_v19 = vld [vmem:[%s517_s5 + $0x18] sm:$0xff]  ;;  %v222_v20 = vld [vmem:[%s517_s5 + $0x10] sm:$0xff] }
   0x6   :  { %368 = vmatmul.mubr.msk.f32.vlgmr.msra.gmra.mxu0 %vm37_vm0, %v27_v5  ;;  %373 = vmatpush3.msra.mxu1 %v127_v4  ;;  %v221_v21 = vld [vmem:[%s517_s5 + $0x8] sm:$0xff]  ;;  %v220_v22 = vld [vmem:[%s517_s5] sm:$0xff] }
   0x7   :  { %374 = vmatprep.subr.mxu1 %v126_v6  ;;  %389 = vmatprep.subr.mxu0 %v223_v19  ;;  %v335_v23 = vld [vmem:[%s518_s4] ss:$0 sm:$0xff] }
   0x8   :  { %375 = vmatpush3.msra.mxu1 %v126_v6  ;;  %390 = vmatpush3.msra.mxu0 %v223_v19  ;;  %v338_v30 = vld [vmem:[%s519_s6] ss:$0 sm:$0xff] }
   0x9   :  { %376 = vmatprep.subr.mxu1 %v125_v7  ;;  %391 = vmatprep.subr.mxu0 %v222_v20 }
   0xa   :  { %377 = vmatpush3.msra.mxu1 %v125_v7  ;;  %392 = vmatpush3.msra.mxu0 %v222_v20 }
   0xb   :  { %378 = vmatprep.subr.mxu1 %v124_v8  ;;  %393 = vmatprep.subr.mxu0 %v221_v21 }
   0xc   :  { %379 = vmatpush3.msra.mxu1 %v124_v8  ;;  %394 = vmatpush3.msra.mxu0 %v221_v21 }
   0xd   :  { %380 = vmatprep.subr.mxu1 %v123_v9  ;;  %395 = vmatprep.subr.mxu0 %v220_v22 }
   0xe   :  { %381 = vmatpush3.msra.mxu1 %v123_v9  ;;  %396 = vmatpush3.msra.mxu0 %v220_v22 }
   0xf   :  { %382 = vmatprep.subr.mxu1 %v122_v10 }
  0x10   :  { %383 = vmatpush3.msra.mxu1 %v122_v10 }
  0x11   :  { %384 = vmatprep.subr.mxu1 %v121_v11 }
  0x12   :  { %385 = vmatpush3.msra.mxu1 %v121_v11 }
  0xc6   :  { %v369_v13 = vpop.f32.mrf.mxu0 }
  0xc7   :  { %v116_v14 = vadd.f32 %v369_v13, %v332_v12 }
  0xc8   :  { %v110_v15 = vpop.f32.mrf.mxu0 }
  0xc9   :  { %v111_v16 = vadd.f32 %v332_v12, %v110_v15  ;;  %v120_v18 = vmax.f32 %v116_v14, 0.0 }
  0xcb   :  { %v119_v17 = vmax.f32 %v111_v16, 0.0 }
  0xcd   :  { %386 = vmatprep.mubr.msk.f32.mxu1 %vm136_vm1, %v119_v17 }
  0xce   :  { %387 = vmatmul.mubr.msk.f32.vlgmr.msra.gmra.mxu1 %vm136_vm1, %v120_v18 }
 0x18e   :  { %v388_v24 = vpop.f32.mrf.mxu1 }
 0x18f   :  { %v215_v25 = vadd.f32 %v388_v24, %v335_v23 }
 0x190   :  { %v209_v26 = vpop.f32.mrf.mxu1 }
 0x191   :  { %v210_v27 = vadd.f32 %v335_v23, %v209_v26  ;;  %v219_v29 = vmax.f32 %v215_v25, 0.0 }
 0x193   :  { %v218_v28 = vmax.f32 %v210_v27, 0.0 }
 0x195   :  { %397 = vmatprep.mubr.msk.f32.mxu0 %vm231_vm2, %v218_v28 }
 0x196   :  { %398 = vmatmul.mubr.msk.f32.vlgmr.msra.gmra.mxu0 %vm231_vm2, %v219_v29 }
 0x256   :  { %v399_v31 = vpop.f32.mrf.mxu0 }
 0x257   :  { %v310_v32 = vadd.f32 %v399_v31, %v338_v30 }
 0x258   :  { %v304_v33 = vpop.f32.mrf.mxu0 }
 0x259   :  { %v342_v34 = vmul.f32 -1.442695, %v310_v32  ;;  %v305_v35 = vadd.f32 %v338_v30, %v304_v33 }
 0x25b   :  { %400 = vpow2.f32 %v342_v34  ;;  %v341_v36 = vmul.f32 -1.442695, %v305_v35 }
 0x25d   :  { %402 = vpow2.f32 %v341_v36 }
 0x268   :  { %v401_v37 = vpop.eup %400 }
 0x269   :  { %v320_v38 = vadd.f32 1.0, %v401_v37 }
 0x26a   :  { %v403_v39 = vpop.eup %402 }
 0x26b   :  { %404 = vrcp.f32 %v320_v38  ;;  %v319_v40 = vadd.f32 1.0, %v403_v39 }
 0x26d   :  { %406 = vrcp.f32 %v319_v40 }
 0x278   :  { %v405_v41 = vpop.eup %404 }
 0x279   :  { %327 = vst.msk [vmem:[%s520_s7 + $0x8] sm:$0xff] %vm325_vm3, %v405_v41 }
 0x27a   :  { %v407_v42 = vpop.eup %406 }
 0x27b   :  { %326 = vst.msk [vmem:[%s520_s7] sm:$0xff] %vm325_vm3, %v407_v42 }

</bundles_post_ra>
